<compile_context>
chip_gen: v7x
topology: tpu7x:2x2x1
jax: 0.10.0
libtpu: 0.0.40
codegen_flags: <defaults>
</compile_context>

<pallas_src>
import math
from functools import partial

import jax
import jax.numpy as jnp
from jax.experimental import pallas as pl
from jax.experimental.pallas import tpu as pltpu

EPS = 1e-6
_LANE = 128
_MAX_DP = 512      # cap on packed lane width (A matrix stays <= 1 MiB f32)
_MAX_TB = 8        # cap on static batch-unroll inside the kernel


# --------------------------------------------------------------------------- #
# Kernels
# --------------------------------------------------------------------------- #
def _rms_kernel_mean(x_ref, gamma_ref, o_ref):
    """Unpacked path (D is the whole last dim).

    x_ref/o_ref: (TB, 1, TS, D); gamma_ref: (1, 1, D).
    """
    g = gamma_ref[0].astype(jnp.float32) + 1.0               # (1, D)
    for b in range(x_ref.shape[0]):                          # static TB unroll
        xf = x_ref[b, 0].astype(jnp.float32)                 # (TS, D)
        ms = jnp.mean(xf * xf, axis=-1, keepdims=True)       # (TS, 1)
        inv = jax.lax.rsqrt(ms + EPS)
        o_ref[b, 0] = (xf * inv * g).astype(o_ref.dtype)


def _rms_kernel_matmul(x_ref, gamma_ref, a_ref, o_ref, *, inv_dim):
    """Lane-packed path: lane j holds feature j % D of packed row-group j // D.

    x_ref/o_ref: (TB, 1, TS, Dp); gamma_ref: (1, 1, Dp); a_ref: (Dp, Dp).
    a_ref is block-diagonal with ones in each DxD block, so (x^2 @ A) yields
    the per-group sum of squares broadcast to every lane of its group in a
    single MXU op (no per-group XLU reduces / selects).
    """
    g = gamma_ref[0].astype(jnp.float32) + 1.0                # (1, Dp)
    a = a_ref[...]                                            # (Dp, Dp) f32
    for b in range(x_ref.shape[0]):                           # static TB unroll
        xf = x_ref[b, 0].astype(jnp.float32)                  # (TS, Dp)
        gsum = jnp.dot(xf * xf, a, preferred_element_type=jnp.float32)
        inv = jax.lax.rsqrt(gsum * inv_dim + EPS)             # exact 1/D on VPU
        o_ref[b, 0] = (xf * inv * g).astype(o_ref.dtype)


# --------------------------------------------------------------------------- #
# Tiling / packing helpers
# --------------------------------------------------------------------------- #
def _pick_packing(d):
    """Smallest k such that k*D is a multiple of 128 (and not absurdly wide)."""
    if d % _LANE == 0:
        return 1
    k = _LANE // math.gcd(d, _LANE)
    if d * k <= _MAX_DP:
        return k
    # TODO(synk): for widths like D=100 one could instead pad D to 128; fall
    # back to narrow (masked-store) lanes, which is correct but slower.
    return 1


def _choose_tiling(sp, batch, bytes_per_row, sub, target_block_bytes):
    """Returns (TB, TS, NS, sp_padded) for the packed row axis of length sp."""
    row_budget = max(sub, (target_block_bytes // max(bytes_per_row, 1)) // sub * sub)
    if sp <= row_budget:
        # Whole (packed) row axis fits in one tile; widen over batch so each
        # grid step still streams a large DMA payload.
        max_tb = max(1, min(batch, row_budget // max(sp, 1), _MAX_TB))
        tb = 1
        for cand in range(max_tb, 0, -1):
            if batch % cand == 0:
                tb = cand
                break
        return tb, sp, 1, sp
    # Tile the row axis.  Prefer an exact divisor (no padded tail); otherwise
    # pad the row count up to a multiple of a budget-sized tile so awkward
    # sequence lengths never degrade to tiny tiles (or blow past VMEM).
    best = 0
    t = sub
    while t <= row_budget:
        if sp % t == 0:
            best = t
        t += sub
    ts = best if best * 2 >= row_budget else row_budget
    ns = -(-sp // ts)
    return 1, ts, ns, ns * ts


# --------------------------------------------------------------------------- #
# Wrapper
# --------------------------------------------------------------------------- #
def multihead_rmsnorm(x, gamma, *, target_block_bytes=4 << 20):
    """x: (B, H, S, D); gamma: (H, 1, D). Returns same shape/dtype as x."""
    B, H, S, D = x.shape
    assert gamma.shape == (H, 1, D), gamma.shape

    itemsize = jnp.dtype(x.dtype).itemsize
    sub = 8 * max(1, 4 // itemsize)            # sublane quantum (8 f32 / 16 bf16)

    k = _pick_packing(D)
    Dp = D * k
    sp_raw = -(-S // k)                        # packed rows per (b, h)
    bytes_per_row = Dp * itemsize
    TB, TS, NS, Sp = _choose_tiling(sp_raw, B, bytes_per_row, sub, target_block_bytes)
    S_total = Sp * k

    if S_total != S:                           # pad once for packing + row tiling
        x = jnp.pad(x, ((0, 0), (0, 0), (0, S_total - S), (0, 0)))
    x_p = x.reshape(B, H, Sp, Dp)              # contiguous reshape (free)
    gamma_p = jnp.tile(gamma, (1, 1, k)) if k > 1 else gamma       # (H, 1, Dp)

    # H slowest -> gamma's (and A's) block index is constant across the inner
    # (B/TB)*NS steps, so those tiles stay resident in VMEM.
    grid = (H, B // TB, NS)

    x_spec = pl.BlockSpec((TB, 1, TS, Dp), lambda h, b, s: (b, h, s, 0))
    g_spec = pl.BlockSpec((1, 1, Dp), lambda h, b, s: (h, 0, 0))
    o_spec = pl.BlockSpec((TB, 1, TS, Dp), lambda h, b, s: (b, h, s, 0))

    operands = [x_p, gamma_p]
    in_specs = [x_spec, g_spec]
    if k > 1:
        # Block-diagonal 0/1 matrix: A[i, j] = 1 iff i//D == j//D (exact in any
        # MXU precision mode); the 1/D scale is applied in f32 inside the kernel.
        a_mat = jnp.kron(jnp.eye(k, dtype=jnp.float32),
                         jnp.ones((D, D), dtype=jnp.float32))
        operands.append(a_mat)
        in_specs.append(pl.BlockSpec((Dp, Dp), lambda h, b, s: (0, 0)))
        kernel = partial(_rms_kernel_matmul, inv_dim=1.0 / D)
    else:
        kernel = _rms_kernel_mean

    # Double-buffered in + out ~= 4 * block; keep the scoped limit <= 48 MiB so
    # the budget also fits v7x's 64 MiB physical VMEM.
    block_bytes = TB * TS * Dp * itemsize
    vmem_limit = int(min(48 << 20, max(32 << 20, 5 * block_bytes)))

    out_p = pl.pallas_call(
        kernel,
        out_shape=jax.ShapeDtypeStruct((B, H, Sp, Dp), x.dtype),
        grid_spec=pltpu.PrefetchScalarGridSpec(
            num_scalar_prefetch=0,
            grid=grid,
            in_specs=in_specs,
            out_specs=o_spec,
        ),
        compiler_params=pltpu.CompilerParams(
            # Every tile is independent -> all axes parallel (megacore / 2 TCs).
            # TODO(synk): on v7x prefer shapes where H*(B/TB)*NS is even so the
            # two TensorCores stay balanced.
            dimension_semantics=("parallel", "parallel", "parallel"),
            vmem_limit_bytes=vmem_limit,
        ),
    )(*operands)

    out = out_p.reshape(B, H, S_total, D)
    if S_total != S:
        out = out[:, :, :S, :]
    return out


def multihead_rmsnorm_ref(x, gamma):
    x32 = x.astype(jnp.float32)
    ms = jnp.mean(x32 * x32, axis=-1, keepdims=True)
    y = x32 * jax.lax.rsqrt(ms + EPS)
    g = gamma.astype(jnp.float32) + 1.0
    return (y * g[None, :, :, :]).astype(x.dtype)


# --------------------------------------------------------------------------- #
# Self-test
# --------------------------------------------------------------------------- #
if __name__ == "__main__":
    key = jax.random.PRNGKey(0)
    ks = jax.random.split(key, 8)

    def check(name, out, ref, tol):
        assert out.shape == ref.shape and out.dtype == ref.dtype, name
        err = float(jnp.max(jnp.abs(out.astype(jnp.float32) - ref.astype(jnp.float32))))
        assert err < tol, f"{name}: max abs err {err} >= {tol}"

    # Case 1: D=32 -> lane packing (k=4, Dp=128), MXU block-diagonal reduce,
    #         short packed seq -> batch-widened blocks (TB=2).
    B, H, S, D = 2, 4, 16, 32
    x = jax.random.normal(ks[0], (B, H, S, D), dtype=jnp.float32)
    gamma = 0.1 * jax.random.normal(ks[1], (H, 1, D), dtype=jnp.float32)
    out = jax.block_until_ready(multihead_rmsnorm(x, gamma))
    check("packed D=32", out, multihead_rmsnorm_ref(x, gamma), 2e-3)

    # Case 2: D=128 (already lane-dense, per-row mean path) with the row axis
    #         force-tiled (TS=64, NS=4) via a tiny block-byte budget.
    B2, H2, S2, D2 = 1, 2, 256, 128
    x2 = jax.random.normal(ks[2], (B2, H2, S2, D2), dtype=jnp.float32)
    gamma2 = 0.1 * jax.random.normal(ks[3], (H2, 1, D2), dtype=jnp.float32)
    out2 = jax.block_until_ready(
        multihead_rmsnorm(x2, gamma2, target_block_bytes=64 * D2 * 4))
    check("tiled D=128", out2, multihead_rmsnorm_ref(x2, gamma2), 1e-5)

    # Case 3: D=96 (non-power-of-two) -> k=4, Dp=384; S=50 not a multiple of k
    #         -> wrapper zero-pads S and trims the result.
    B3, H3, S3, D3 = 1, 2, 50, 96
    x3 = jax.random.normal(ks[4], (B3, H3, S3, D3), dtype=jnp.float32)
    gamma3 = 0.1 * jax.random.normal(ks[5], (H3, 1, D3), dtype=jnp.float32)
    out3 = jax.block_until_ready(multihead_rmsnorm(x3, gamma3))
    check("padded D=96", out3, multihead_rmsnorm_ref(x3, gamma3), 2e-3)

    # Case 4: bf16 input/output (all math in f32, single final cast).
    B4, H4, S4, D4 = 2, 2, 18, 64
    x4 = jax.random.normal(ks[6], (B4, H4, S4, D4), dtype=jnp.float32).astype(jnp.bfloat16)
    gamma4 = (0.1 * jax.random.normal(ks[7], (H4, 1, D4),
                                      dtype=jnp.float32)).astype(jnp.bfloat16)
    out4 = jax.block_until_ready(multihead_rmsnorm(x4, gamma4))
    check("bf16 D=64", out4, multihead_rmsnorm_ref(x4, gamma4), 3e-2)

    print("KERNEL_OK")
</pallas_src>

<mosaic_0001>
module attributes {stable_mosaic.version = 11 : i64} {
  func.func @_rms_kernel_matmul(%arg0: i32, %arg1: i32, %arg2: i32, %arg3: memref<2x1x4x128xf32, #tpu.memory_space<vmem>>, %arg4: memref<1x1x128xf32, #tpu.memory_space<vmem>>, %arg5: memref<128x128xf32, #tpu.memory_space<vmem>>, %arg6: memref<2x1x4x128xf32, #tpu.memory_space<vmem>>) attributes {dimension_semantics = [#tpu.dimension_semantics<parallel>, #tpu.dimension_semantics<parallel>, #tpu.dimension_semantics<parallel>], iteration_bounds = array<i64: 4, 1, 1>, scalar_prefetch = 0 : i64, scratch_operands = 0 : i64, tpu.core_type = #tpu.core_type<tc>, window_params = [{transform_indices = @transform_0, window_bounds = array<i64: 2, 1, 4, 128>}, {transform_indices = @transform_1, window_bounds = array<i64: 1, 1, 128>}, {pipeline_mode = #tpu.pipeline_mode<synchronous>, transform_indices = @transform_2, window_bounds = array<i64: 128, 128>}, {transform_indices = @transform_3, window_bounds = array<i64: 2, 1, 4, 128>}]} {
    %c0 = arith.constant 0 : index
    %c0_0 = arith.constant 0 : index
    %c0_1 = arith.constant 0 : index
    %0 = vector.load %arg4[%c0, %c0_0, %c0_1] : memref<1x1x128xf32, #tpu.memory_space<vmem>>, vector<1x1x128xf32>
    %1 = vector.shape_cast %0 : vector<1x1x128xf32> to vector<1x128xf32>
    %cst = arith.constant 1.000000e+00 : f32
    %2 = vector.broadcast %cst : f32 to vector<1x128xf32>
    %3 = arith.addf %1, %2 : vector<1x128xf32>
    %c0_2 = arith.constant 0 : index
    %c0_3 = arith.constant 0 : index
    %4 = vector.load %arg5[%c0_2, %c0_3] : memref<128x128xf32, #tpu.memory_space<vmem>>, vector<128x128xf32>
    %c0_4 = arith.constant 0 : index
    %c0_5 = arith.constant 0 : index
    %c0_6 = arith.constant 0 : index
    %c0_7 = arith.constant 0 : index
    %5 = vector.load %arg3[%c0_4, %c0_5, %c0_6, %c0_7] : memref<2x1x4x128xf32, #tpu.memory_space<vmem>>, vector<1x1x4x128xf32>
    %6 = vector.shape_cast %5 : vector<1x1x4x128xf32> to vector<4x128xf32>
    %7 = arith.mulf %6, %6 : vector<4x128xf32>
    %cst_8 = arith.constant dense<0.000000e+00> : vector<4x128xf32>
    %8 = tpu.matmul %7, %4, %cst_8 {dimension_numbers = #tpu.dot_dimension_numbers<[1], [0], [0], [1], [0, 0, 1, 1], [], []>} : vector<4x128xf32>, vector<128x128xf32>, vector<4x128xf32> -> vector<4x128xf32>
    %cst_9 = arith.constant 3.125000e-02 : f32
    %9 = vector.broadcast %cst_9 : f32 to vector<4x128xf32>
    %10 = arith.mulf %8, %9 : vector<4x128xf32>
    %cst_10 = arith.constant 9.99999997E-7 : f32
    %11 = vector.broadcast %cst_10 : f32 to vector<4x128xf32>
    %12 = arith.addf %10, %11 : vector<4x128xf32>
    %13 = math.rsqrt %12 : vector<4x128xf32>
    %14 = arith.mulf %6, %13 : vector<4x128xf32>
    %15 = vector.broadcast %3 : vector<1x128xf32> to vector<4x128xf32>
    %16 = arith.mulf %14, %15 : vector<4x128xf32>
    %c0_11 = arith.constant 0 : index
    %c0_12 = arith.constant 0 : index
    %c0_13 = arith.constant 0 : index
    %c0_14 = arith.constant 0 : index
    %17 = vector.load %arg6[%c0_11, %c0_12, %c0_13, %c0_14] : memref<2x1x4x128xf32, #tpu.memory_space<vmem>>, vector<1x1x4x128xf32>
    %18 = vector.shape_cast %17 : vector<1x1x4x128xf32> to vector<4x128xf32>
    %19 = vector.shape_cast %16 : vector<4x128xf32> to vector<1x1x4x128xf32>
    tpu.vector_store %arg6[%c0_11, %c0_12, %c0_13, %c0_14], %19 {strides = array<i32>} : memref<2x1x4x128xf32, #tpu.memory_space<vmem>>, vector<1x1x4x128xf32>,
    %c1 = arith.constant 1 : index
    %c0_15 = arith.constant 0 : index
    %c0_16 = arith.constant 0 : index
    %c0_17 = arith.constant 0 : index
    %20 = vector.load %arg3[%c1, %c0_15, %c0_16, %c0_17] : memref<2x1x4x128xf32, #tpu.memory_space<vmem>>, vector<1x1x4x128xf32>
    %21 = vector.shape_cast %20 : vector<1x1x4x128xf32> to vector<4x128xf32>
    %22 = arith.mulf %21, %21 : vector<4x128xf32>
    %cst_18 = arith.constant dense<0.000000e+00> : vector<4x128xf32>
    %23 = tpu.matmul %22, %4, %cst_18 {dimension_numbers = #tpu.dot_dimension_numbers<[1], [0], [0], [1], [0, 0, 1, 1], [], []>} : vector<4x128xf32>, vector<128x128xf32>, vector<4x128xf32> -> vector<4x128xf32>
    %cst_19 = arith.constant 3.125000e-02 : f32
    %24 = vector.broadcast %cst_19 : f32 to vector<4x128xf32>
    %25 = arith.mulf %23, %24 : vector<4x128xf32>
    %cst_20 = arith.constant 9.99999997E-7 : f32
    %26 = vector.broadcast %cst_20 : f32 to vector<4x128xf32>
    %27 = arith.addf %25, %26 : vector<4x128xf32>
    %28 = math.rsqrt %27 : vector<4x128xf32>
    %29 = arith.mulf %21, %28 : vector<4x128xf32>
    %30 = vector.broadcast %3 : vector<1x128xf32> to vector<4x128xf32>
    %31 = arith.mulf %29, %30 : vector<4x128xf32>
    %c1_21 = arith.constant 1 : index
    %c0_22 = arith.constant 0 : index
    %c0_23 = arith.constant 0 : index
    %c0_24 = arith.constant 0 : index
    %32 = vector.load %arg6[%c1_21, %c0_22, %c0_23, %c0_24] : memref<2x1x4x128xf32, #tpu.memory_space<vmem>>, vector<1x1x4x128xf32>
    %33 = vector.shape_cast %32 : vector<1x1x4x128xf32> to vector<4x128xf32>
    %34 = vector.shape_cast %31 : vector<4x128xf32> to vector<1x1x4x128xf32>
    tpu.vector_store %arg6[%c1_21, %c0_22, %c0_23, %c0_24], %34 {strides = array<i32>} : memref<2x1x4x128xf32, #tpu.memory_space<vmem>>, vector<1x1x4x128xf32>,
    return
  }
  func.func @transform_0(%arg0: i32, %arg1: i32, %arg2: i32) -> (i32, i32, i32, i32) {
    %c0_i32 = arith.constant 0 : i32
    %c0_i32_0 = arith.constant 0 : i32
    return %arg1, %arg0, %arg2, %c0_i32 : i32, i32, i32, i32
  }
  func.func @transform_1(%arg0: i32, %arg1: i32, %arg2: i32) -> (i32, i32, i32) {
    %c0_i32 = arith.constant 0 : i32
    %c0_i32_0 = arith.constant 0 : i32
    %c0_i32_1 = arith.constant 0 : i32
    return %arg0, %c0_i32, %c0_i32_0 : i32, i32, i32
  }
  func.func @transform_2(%arg0: i32, %arg1: i32, %arg2: i32) -> (i32, i32) {
    %c0_i32 = arith.constant 0 : i32
    %c0_i32_0 = arith.constant 0 : i32
    %c0_i32_1 = arith.constant 0 : i32
    return %c0_i32, %c0_i32_0 : i32, i32
  }
  func.func @transform_3(%arg0: i32, %arg1: i32, %arg2: i32) -> (i32, i32, i32, i32) {
    %c0_i32 = arith.constant 0 : i32
    %c0_i32_0 = arith.constant 0 : i32
    return %arg1, %arg0, %arg2, %c0_i32 : i32, i32, i32, i32
  }
}

</mosaic_0001>

<bundles_post_ra>
// kernel: tpu_custom_call.1
= control target key start
LH: loop header
LB: loop body
LE: loop exit
PB: predicated region body
PF: predicated region fallthrough
CT: control target
= control target key end

     0   :  { %s1337_s0 = inlined_call_operand.hbm [shape: f32[2,4,4,128], index: 0, kind: input, shape index: {}]   ;;  %s1338_s1 = inlined_call_operand.hbm [shape: f32[4,1,128], index: 1, kind: input, shape index: {}]   ;;  %s1339_s2 = inlined_call_operand.hbm [shape: f32[128,128], index: 2, kind: input, shape index: {}]   ;;  %s1340_s3 = inlined_call_operand.hbm [shape: f32[2,4,4,128], index: 3, kind: output, shape index: {}]  }
   0x1   :  { %1347 = sst [smem:[#allocation14_spill]] %s1337_s0 }
   0x2   :  { %1348 = sst [smem:[#allocation15_spill]] %s1339_s2 }
   0x3   :  { %8 = vsyncpa [#allocation3], 0 }
   0x4   :  { %10 = vsyncpa [#allocation3 + $0x1], 0 }
   0x5   :  { %11 = vsyncpa [#allocation6], 0 }
   0x6   :  { %13 = vsyncpa [#allocation6 + $0x1], 0 }
   0x7   :  { %14 = vsyncpa [#allocation4], 0 }
   0x8   :  { %16 = vsyncpa [#allocation4 + $0x1], 0  ;;  %s1065_s12 = smov 0   ;;  %s1067_s13 = smov 0  }
   0x9   :  { %s1069_s14 = smov 0   ;;  %s1071_s15 = smov 0  }
   0xa   :  { %s1073_s16 = smov 0   ;;  %s1075_s17 = smov 0  }
   0xb LB: > { %s1096_s18 = sadd.s32 4294967295, %s1028_s17   ;;  %s588_s19 = sadd.s32 4294967294, %s1028_s17   ;;  %s1028_s17 = sphi %s1075_s17, %s22_s17   ;;  %s1024_s16 = sphi %s1073_s16, %s1373_s16   ;;  %s1020_s15 = sphi %s1071_s15, %s1372_s15   ;;  %s1016_s14 = sphi %s1069_s14, %s1371_s14   ;;  %s1012_s13 = sphi %s1067_s13, %s1370_s13   ;;  %s1008_s12 = sphi %s1065_s12, %s1369_s12  }
   0xc   : > { %s52_s20 = sadd.s32 1, %s1016_s14  ;;  %p59_p0 = scmp.ne.s32.totalorder %s1016_s14, %s1012_s13 }
   0xd   : > { %p60_p1 = scmp.eq.s32.totalorder %s1028_s17, 0  ;;  %p65_p2 = scmp.ne.s32.totalorder %s1012_s13, %s1008_s12 }
   0xe   : > { %p1341_p3 = scmp.eq.s32.totalorder %s1096_s18, 0  ;;  %p140_p4 = scmp.eq.s32.totalorder %s1096_s18, 3 }
   0xf   : > { %p1107_p5 = por %p60_p1, %p59_p0  ;;  %p146_p6 = scmp.eq.s32.totalorder %s588_s19, 3 }
  0x10   : > { %p1113_p7 = por %p1341_p3, %p65_p2  ;;  %p1117_p8 = por %p140_p4, %p59_p0 }
  0x11   : > { %p1121_p9 = por %p146_p6, %p65_p2  ;;  %p589_p10 = scmp.ge.s32.totalorder %s1028_s17, 1 }
  0x12   : > { %s1350_s22 = scalar_select %p1113_p7, 1, 0 }
  0x13   : > { %s1351_s23 = scalar_select %p1117_p8, 1, 0 }
  0x14   : > { %s1352_s24 = scalar_select %p1121_p9, 1, 0 }
  0x15   : > { %p153_p11 = scmp.lt.s32.totalorder %s1028_s17, 5  ;;  %s1030_s26 = smov [#allocation7]  }
  0x16   : > { %s165_s27 = sshll.u32 %s1030_s26, 4  ;;  %p783_p0 = scmp.lt.s32.totalorder %s1028_s17, 4  ;;  %s1131_s27 = int_to_ptr.vmem [resolvable:$true] %s165_s27 }
  0x17   : > { %p1127_p12 = pnand %p589_p10, %p153_p11  ;;  %s41_s30 = sadd.s32 1, %s1024_s16 }
  0x18   : > { %p1144_p2 = pnand %p783_p0, %p1107_p5  ;;  %p1149_p4 = scmp.ge.s32.totalorder %s41_s30, 4 }
  0x19   : > { %s1353_s25 = scalar_select %p1127_p12, 1, 0 }
  0x1a   : > { %p767_p13 = pneg %p1127_p12  ;;  %s1357_s2 = sld [smem:[#allocation15_spill]] }
  0x1b   : > { %s1355_s29 = scalar_select %p1144_p2, 1, 0 }
  0x1c   : > { %p1138_p1 = pnand %p767_p13, %p1341_p3 }
  0x1d   : > { %s1356_s4 = scalar_select %p1149_p4, 1, 0 }
  0x1e   : > { %p852_p10 = pneg %p1138_p1 }
  0x20   : > { %s850_s7 = scalar_lea.hbm %s1357_s2, 2048 }
  0x21   : > { %p851_p6 = scmp.ne.s32.totalorder %s1357_s2, %s850_s7  ;;  %p857_p13 = scmp.lt.u32.totalorder %s850_s7, %s1357_s2 }
  0x23   : > { %p853_p11 = pnand %p852_p10, %p851_p6 }
  0x25   : > { %p854_p5 = pneg %p853_p11 }
  0x27   : > { %p859_p0 = pnand %p857_p13, %p854_p5 }
  0x29   : > { %862 = shalt.err (!%p859_p0)
}
  0x2a   : > { %s863_s19 = scalar_lea.vmem %s1131_s27, 2048  ;;  %p871_p7 = scmp.lt.s32.totalorder %s1131_s27, %s1131_s27 }
  0x2b   : > { %p864_p3 = scmp.ne.s32.totalorder %s1131_s27, %s863_s19  ;;  %p872_p12 = scmp.lt.s32.totalorder %s863_s19, %s863_s19 }
  0x2d   : > { %p866_p9 = pnand %p864_p3, %p852_p10  ;;  %p873_p2 = por %p872_p12, %p871_p7 }
  0x2f   : > { %p867_p8 = pneg %p866_p9 }
  0x31   : > { %p874_p4 = pnand %p873_p2, %p867_p8 }
  0x33   : > { %877 = shalt.err (!%p874_p4)
}
  0x34   : > { %s1031_s21 = smov 128   ;;  %s1032_s26 = smov 8  }
  0x35   : > { %770 = dma.hbm_to_vmem [thread:$0]  (!%p1138_p1), %s1357_s2, 2048, %s1131_s27, [#allocation6], %s1031_s21, %s1031_s21, %s1032_s26  }
  0x36   : > { %s1175_s7 = sand.u32 1, %s1016_s14   ;;  %p1358_p3 = scmp.ne.s32.totalorder %s1356_s4, 0 }
  0x37   : > { %s592_s8 = sshll.u32 %s1175_s7, 3  ;;  %s593_s10 = sshll.u32 %s1024_s16, 6 }
  0x38   : > { %s1375_s30 = smov (%p1358_p3, %s41_s30), 0  ;;  %s1360_s0 = sld [smem:[#allocation14_spill]] }
  0x39   : > { %1359 = sst [smem:[#allocation13_spill]] %s1375_s30  ;;  %s46_s9 = ssub.s32 %s1024_s16, %s1375_s30 }
  0x3a   : > { %p50_p7 = scmp.eq.s32.totalorder %s46_s9, 0  ;;  %s183_s27 = scalar_lea.vmem [#allocation2], %s592_s8 }
  0x3b   : > { %s193_s4 = sshll.u32 %s183_s27, 4  ;;  %s180_s26 = scalar_lea.sflag [#allocation3], %s1175_s7  ;;  %s1195_s4 = int_to_ptr.vmem [resolvable:$true] %s193_s4 }
  0x3c   : > { %s1193_s21 = scalar_select %p50_p7, %s1016_s14, %s52_s20  }
  0x3d   : > { %p1361_p9 = scmp.ne.s32.totalorder %s1355_s29, 0 }
  0x3e   : > { %s1188_s19 = scalar_lea.hbm %s1360_s0, %s593_s10  ;;  %s883_s10 = scalar_lea.hbm %s1360_s0, 512 }
  0x3f   : > { %s878_s5 = scalar_lea.hbm %s1188_s19, 128  ;;  %p880_p12 = pneg %p1361_p9 }
  0x40   : > { %p879_p8 = scmp.ne.s32.totalorder %s1188_s19, %s878_s5  ;;  %p884_p4 = scmp.lt.u32.totalorder %s1188_s19, %s1360_s0 }
  0x41   : > { %p885_p6 = scmp.lt.u32.totalorder %s883_s10, %s878_s5  ;;  %p887_p11 = scmp.lt.u32.totalorder %s878_s5, %s1188_s19 }
  0x42   : > { %p881_p1 = pnand %p880_p12, %p879_p8 }
  0x43   : > { %p886_p10 = por %p885_p6, %p884_p4 }
  0x44   : > { %p882_p2 = pneg %p881_p1 }
  0x45   : > { %p888_p5 = por %p887_p11, %p886_p10 }
  0x47   : > { %p889_p13 = pnand %p888_p5, %p882_p2 }
  0x49   : > { %892 = shalt.err (!%p889_p13)
}
  0x4a   : > { %s893_s20 = scalar_lea.vmem %s1195_s4, 128  ;;  %s1033_s28 = smov [#allocation2]  }
  0x4b   : > { %p894_p0 = scmp.ne.s32.totalorder %s1195_s4, %s893_s20  ;;  %s898_s27 = sshll.u32 %s1033_s28, 4  ;;  %s899_s27 = int_to_ptr.vmem [resolvable:$false] %s898_s27 }
  0x4c   : > { %s900_s6 = scalar_lea.vmem %s899_s27, 256  ;;  %p901_p8 = scmp.lt.s32.totalorder %s1195_s4, %s899_s27 }
  0x4d   : > { %p896_p3 = pnand %p894_p0, %p880_p12  ;;  %p902_p1 = scmp.lt.s32.totalorder %s900_s6, %s893_s20 }
  0x4f   : > { %p897_p7 = pneg %p896_p3  ;;  %p903_p4 = por %p902_p1, %p901_p8 }
  0x51   : > { %p904_p6 = pnand %p903_p4, %p897_p7 }
  0x53   : > { %907 = shalt.err (!%p904_p6)
}
  0x54   : > { %s1034_s5 = smov 256   ;;  %s1035_s9 = smov 64  }
  0x55   : > { %s1036_s10 = smov 4   ;;  %s203_s8 = sand.u32 1, %s1028_s17  }
  0x56   : > { %774 = dma.hbm_to_vmem [thread:$0]  (!%p1361_p9), %s1188_s19, 128, %s1195_s4, %s180_s26, %s1034_s5, %s1035_s9, %s1036_s10  }
  0x57   : > { %s594_s11 = sshll.u32 %s1024_s16, 4  ;;  %s206_s6 = scalar_lea.vmem [#allocation5], %s1175_s7 }
  0x58   : > { %s1230_s27 = scalar_lea.hbm %s1338_s1, %s594_s11  ;;  %s213_s0 = sshll.u32 %s206_s6, 4  ;;  %s214_s0 = int_to_ptr.vmem [resolvable:$true] %s213_s0 }
  0x59   : > { %s204_s2 = scalar_lea.sflag [#allocation6], %s203_s8  ;;  %s908_s30 = scalar_lea.hbm %s1230_s27, 16 }
  0x5a   : > { %p909_p2 = scmp.ne.s32.totalorder %s1230_s27, %s908_s30  ;;  %s913_s26 = scalar_lea.hbm %s1338_s1, 64 }
  0x5b   : > { %p914_p5 = scmp.lt.u32.totalorder %s1230_s27, %s1338_s1  ;;  %p915_p13 = scmp.lt.u32.totalorder %s913_s26, %s908_s30 }
  0x5c   : > { %p911_p10 = pnand %p909_p2, %p880_p12  ;;  %p917_p3 = scmp.lt.u32.totalorder %s908_s30, %s1230_s27 }
  0x5d   : > { %p916_p0 = por %p915_p13, %p914_p5 }
  0x5e   : > { %p912_p11 = pneg %p911_p10 }
  0x5f   : > { %p918_p7 = por %p917_p3, %p916_p0 }
  0x61   : > { %p919_p8 = pnand %p918_p7, %p912_p11 }
  0x63   : > { %922 = shalt.err (!%p919_p8)
}
  0x64   : > { %s923_s7 = scalar_lea.vmem %s214_s0, 16  ;;  %s1037_s10 = smov [#allocation5]  }
  0x65   : > { %p924_p1 = scmp.ne.s32.totalorder %s214_s0, %s923_s7  ;;  %s928_s8 = sshll.u32 %s1037_s10, 4  ;;  %s929_s8 = int_to_ptr.vmem [resolvable:$false] %s928_s8 }
  0x66   : > { %s930_s11 = scalar_lea.vmem %s929_s8, 32  ;;  %p931_p2 = scmp.lt.s32.totalorder %s214_s0, %s929_s8 }
  0x67   : > { %p926_p4 = pnand %p924_p1, %p880_p12  ;;  %p932_p10 = scmp.lt.s32.totalorder %s930_s11, %s923_s7 }
  0x69   : > { %p927_p6 = pneg %p926_p4  ;;  %p933_p5 = por %p932_p10, %p931_p2 }
  0x6b   : > { %p934_p13 = pnand %p933_p5, %p927_p6 }
  0x6d   : > { %937 = shalt.err (!%p934_p13)
}
  0x6e   : > { %777 = dma.hbm_to_vmem [thread:$0]  (!%p1361_p9), %s1230_s27, 16, %s214_s0, %s204_s2  }
  0x6f   : > { %p1362_p11 = scmp.ne.s32.totalorder %s1353_s25, 0 }
  0x70   : > { %s1255_s30 = sand.u32 (!%p1362_p11), 1, %s1012_s13   ;;  %p1363_p12 = scmp.ne.s32.totalorder (!%p1362_p11), %s1350_s22, 0 }
  0x71   : > { %222 = sbr.rel (%p1362_p11) target bundleno = 409 (0x199), region = 32  ;;  %s596_s20 = sshll.u32 (!%p1362_p11), %s1255_s30, 3 }
  0x72   : > { %s225_s28 = scalar_lea.sflag (!%p1362_p11), [#allocation3], %s1255_s30  ;;  %s1261_s6 = scalar_lea.vmem (!%p1362_p11), [#allocation2], %s596_s20 }
  0x78   : > { %991 = dma.done.wait (%p1363_p12), %s225_s28, 128  }
  0x79   : > { %993 = vsyncadd (%p1363_p12), %s225_s28, 4294967168  ;;  %s233_s0 = sand.u32 1, %s1096_s18   ;;  %s236_s25 = scalar_lea.vmem [#allocation5], %s1255_s30 }
  0x7a   : > { %s234_s2 = scalar_lea.sflag [#allocation6], %s233_s0 }
  0x7b   : > { %995 = dma.done.wait (%p1363_p12), %s234_s2, 16  }
  0x7c   : > { %997 = vsyncadd (%p1363_p12), %s234_s2, 4294967280  ;;  %p1364_p9 = scmp.eq.s32.totalorder %s1096_s18, 0 }
  0x7e   : > { %999 = dma.done.wait (%p1364_p9), [#allocation6], 2048   ;;  %p1365_p0 = pmov %p1364_p9 }
  0x7f   : > { %v1038_v0 = vmov 0.0|0.0   ;;  %vm1039_vm0 = vmmov 0   ;;  %v1040_v1 = vmov 0.0   ;;  %v271_v2 = vld [vmem:[#allocation7] sm:$0xff]  ;;  %v272_v3 = vld [vmem:[#allocation7 + $0x8] sm:$0xff]  ;;  %v273_v4 = vld [vmem:[#allocation7 + $0x10] sm:$0xff]  ;;  %v364_v36 = vlaneseq }
  0x80   : > { %1001 = vsyncadd (%p1365_p0), [#allocation6], 4294965248  ;;  %709 = vmatprep.subr.bf16.mxu0 %v1038_v0  ;;  %733 = vmatprep.subr.bf16.mxu1 %v1038_v0  ;;  %v710_v5 = vpack.c.bf16 %v272_v3, %v271_v2  ;;  %v274_v6 = vld [vmem:[#allocation7 + $0x18] sm:$0xff]  ;;  %v275_v8 = vld [vmem:[#allocation7 + $0x20] sm:$0xff]  ;;  %s602_s18 = sshll.u32 %s1020_s15, 6  ;;  %s266_s22 = scalar_lea.vmem [#allocation8], %s596_s20 }
  0x81   : > { %671 = vmatprep.mubr.msk.f32.mxu0 %vm1039_vm0, %v1040_v1  ;;  %706 = vmatprep.mubr.msk.f32.mxu1 %vm1039_vm0, %v1040_v1  ;;  %v713_v7 = vpack.c.bf16 %v274_v6, %v273_v4  ;;  %v276_v9 = vld [vmem:[#allocation7 + $0x28] sm:$0xff]  ;;  %v277_v11 = vld [vmem:[#allocation7 + $0x30] sm:$0xff]  ;;  %v278_v12 = vld [vmem:[#allocation7 + $0x38] sm:$0xff]  ;;  %v365_v39 = vshrl.u32 %v364_v36, 7  ;;  %s468_s29 = sshll.u32 %s266_s22, 4  ;;  %s1287_s4 = scalar_lea.hbm %s1340_s3, %s602_s18  ;;  %s1289_s29 = int_to_ptr.vmem [resolvable:$true] %s468_s29 }
  0x82   : > { %711 = vmatpush3.bf16.msra.mxu0 %v710_v5  ;;  %735 = vmatpush3.bf16.msra.mxu1 %v710_v5  ;;  %v716_v10 = vpack.c.bf16 %v276_v9, %v275_v8  ;;  %v719_v13 = vpack.c.bf16 %v278_v12, %v277_v11  ;;  %v279_v14 = vld [vmem:[#allocation7 + $0x40] sm:$0xff]  ;;  %v280_v15 = vld [vmem:[#allocation7 + $0x48] sm:$0xff]  ;;  %v281_v17 = vld [vmem:[#allocation7 + $0x50] sm:$0xff]  ;;  %s452_s15 = scalar_lea.sflag [#allocation4], %s1255_s30  ;;  %s938_s26 = scalar_lea.vmem %s1289_s29, 128 }
  0x83   : > { %712 = vmatprep.subr.bf16.mxu0 %v1038_v0  ;;  %736 = vmatprep.subr.bf16.mxu1 %v1038_v0  ;;  %v722_v16 = vpack.c.bf16 %v280_v15, %v279_v14  ;;  %v282_v18 = vld [vmem:[#allocation7 + $0x58] sm:$0xff]  ;;  %v283_v20 = vld [vmem:[#allocation7 + $0x60] sm:$0xff]  ;;  %v284_v21 = vld [vmem:[#allocation7 + $0x68] sm:$0xff]  ;;  %v366_v42 = vsub.s32 0, %v365_v39  ;;  %p939_p3 = scmp.ne.s32.totalorder %s1289_s29, %s938_s26  ;;  %p1366_p7 = scmp.ne.s32.totalorder %s1351_s23, 0 }
  0x84   : > { %v725_v19 = vpack.c.bf16 %v282_v18, %v281_v17  ;;  %v728_v22 = vpack.c.bf16 %v284_v21, %v283_v20  ;;  %v285_v23 = vld [vmem:[#allocation7 + $0x70] sm:$0xff]  ;;  %v286_v24 = vld [vmem:[#allocation7 + $0x78] sm:$0xff]  ;;  %v269_v40 = vld [vmem:[%s236_s25] sm:$0x1]  ;;  %s1041_s5 = smov [#allocation8]  }
  0x85   : > { %v731_v25 = vpack.c.bf16 %v286_v24, %v285_v23  ;;  %v287_v26 = vld [vmem:[%s1261_s6] sm:$0xf]  ;;  %v599_v27 = vld [vmem:[%s1261_s6 + $0x4] sm:$0xf]  ;;  %v270_v41 = vadd.f32 1.0, %v269_v40  ;;  %p940_p8 = pnand %p939_p3, %p1366_p7  ;;  %s942_s9 = sshll.u32 %s1041_s5, 4  ;;  %s943_s9 = int_to_ptr.vmem [resolvable:$false] %s942_s9 }
  0x86   : > { %714 = vmatpush3.bf16.msra.mxu0 %v713_v7  ;;  %738 = vmatpush3.bf16.msra.mxu1 %v713_v7  ;;  %v288_v28 = vmul.f32 %v287_v26, %v287_v26  ;;  %v373_v29 = vmul.f32 %v599_v27, %v599_v27  ;;  %s944_s7 = scalar_lea.vmem %s943_s9, 256  ;;  %p945_p4 = scmp.lt.s32.totalorder %s1289_s29, %s943_s9 }
  0x87   : > { %715 = vmatprep.subr.bf16.mxu0 %v1038_v0  ;;  %739 = vmatprep.subr.bf16.mxu1 %v1038_v0  ;;  %v367_v43 = vrot.slane %v270_v41, %v366_v42  ;;  %p941_p1 = pneg %p940_p8  ;;  %p946_p6 = scmp.lt.s32.totalorder %s944_s7, %s938_s26 }
  0x89   : > { %p947_p2 = por %p946_p6, %p945_p4 }
  0x8a   : > { %717 = vmatpush3.bf16.msra.mxu0 %v716_v10  ;;  %741 = vmatpush3.bf16.msra.mxu1 %v716_v10 }
  0x8b   : > { %718 = vmatprep.subr.bf16.mxu0 %v1038_v0  ;;  %742 = vmatprep.subr.bf16.mxu1 %v1038_v0  ;;  %p948_p10 = pnand %p947_p2, %p941_p1 }
  0x8e   : > { %720 = vmatpush3.bf16.msra.mxu0 %v719_v13  ;;  %744 = vmatpush3.bf16.msra.mxu1 %v719_v13 }
  0x8f   : > { %721 = vmatprep.subr.bf16.mxu0 %v1038_v0  ;;  %745 = vmatprep.subr.bf16.mxu1 %v1038_v0 }
  0x92   : > { %723 = vmatpush3.bf16.msra.mxu0 %v722_v16  ;;  %747 = vmatpush3.bf16.msra.mxu1 %v722_v16 }
  0x93   : > { %724 = vmatprep.subr.bf16.mxu0 %v1038_v0  ;;  %748 = vmatprep.subr.bf16.mxu1 %v1038_v0 }
  0x96   : > { %726 = vmatpush3.bf16.msra.mxu0 %v725_v19  ;;  %750 = vmatpush3.bf16.msra.mxu1 %v725_v19 }
  0x97   : > { %727 = vmatprep.subr.bf16.mxu0 %v1038_v0  ;;  %751 = vmatprep.subr.bf16.mxu1 %v1038_v0 }
  0x9a   : > { %729 = vmatpush3.bf16.msra.mxu0 %v728_v22  ;;  %753 = vmatpush3.bf16.msra.mxu1 %v728_v22 }
  0x9b   : > { %730 = vmatprep.subr.bf16.mxu0 %v1038_v0  ;;  %754 = vmatprep.subr.bf16.mxu1 %v1038_v0 }
  0x9e   : > { %732 = vmatpush3.bf16.msra.mxu0 %v731_v25  ;;  %756 = vmatpush3.bf16.msra.mxu1 %v731_v25 }
  0xa1   : > { %672 = vmatmul.mubr.f32.vlgmr.msra.gmra.mrb[0].mxu0 %v288_v28  ;;  %707 = vmatmul.mubr.f32.vlgmr.msra.gmra.mrb[0].mxu1 %v373_v29 }
 0x174   : > { %v355_v30 = vpop.f32.mrb[0].mxu0  ;;  %v440_v31 = vpop.f32.mrb[0].mxu1 }
 0x175   : > { %v359_v32 = vmul.f32 0.03125, %v355_v30  ;;  %v444_v33 = vmul.f32 0.03125, %v440_v31  ;;  %v673_v34 = vpop.f32.mrb[1].mxu0  ;;  %v708_v35 = vpop.f32.mrb[1].mxu1 }
 0x177   : > { %v360_v37 = vadd.f32 1e-06, %v359_v32  ;;  %v445_v38 = vadd.f32 1e-06, %v444_v33 }
 0x179   : > { %846 = vrsqrt.f32 %v360_v37 }
 0x17a   : > { %848 = vrsqrt.f32 %v445_v38 }
 0x183   : > { %v847_v44 = vpop.eup %846 }
 0x184   : > { %v849_v45 = vpop.eup %848  ;;  %v362_v46 = vmul.f32 %v847_v44, %v287_v26 }
 0x185   : > { %v447_v47 = vmul.f32 %v849_v45, %v599_v27 }
 0x186   : > { %v369_v48 = vmul.f32 %v367_v43, %v362_v46 }
 0x187   : > { %v448_v49 = vmul.f32 %v447_v47, %v367_v43 }
 0x188   : > { %370 = vst [vmem:[%s266_s22] sm:$0xf] %v369_v48 }
 0x189   : > { %600 = vst [vmem:[%s266_s22 + $0x4] sm:$0xf] %v448_v49 }
 0x18a   : > { %951 = shalt.err (!%p948_p10)
}
 0x18b   : > { %s952_s10 = scalar_lea.hbm %s1287_s4, 128  ;;  %s956_s20 = scalar_lea.hbm %s1340_s3, 512 }
 0x18c   : > { %p953_p5 = scmp.ne.s32.totalorder %s1287_s4, %s952_s10  ;;  %p957_p12 = scmp.lt.u32.totalorder %s1287_s4, %s1340_s3 }
 0x18d   : > { %p958_p9 = scmp.lt.u32.totalorder %s956_s20, %s952_s10  ;;  %p960_p3 = scmp.lt.u32.totalorder %s952_s10, %s1287_s4 }
 0x18e   : > { %p954_p13 = pnand %p953_p5, %p1366_p7 }
 0x18f   : > { %p959_p0 = por %p958_p9, %p957_p12 }
 0x190   : > { %p955_p11 = pneg %p954_p13 }
 0x191   : > { %p961_p8 = por %p960_p3, %p959_p0 }
 0x193   : > { %p962_p1 = pnand %p961_p8, %p955_p11 }
 0x195   : > { %965 = shalt.err (!%p962_p1)
}
 0x196   : > { %s1042_s0 = smov 64   ;;  %s1043_s2 = smov 256  }
 0x197   : > { %s1044_s25 = smov 4  }
 0x198   : > { %765 = dma.vmem_to_hbm [thread:$0]  (%p1366_p7), %s1289_s29, 128, %s1287_s4, %s452_s15, %s1042_s0, %s1043_s2, %s1044_s25  }
 0x199 PF: > { %p785_p4 = scmp.ge.s32.totalorder %s1028_s17, 2  ;;  %s483_s18 = sand.u32 1, %s1008_s12  }
 0x19a   : > { %p1367_p6 = scmp.ne.s32.totalorder %s1352_s24, 0  ;;  %s484_s22 = scalar_lea.sflag [#allocation4], %s483_s18 }
 0x19c   : > { %p779_p2 = pnand %p785_p4, %p1367_p6 }
 0x19e   : > { %1003 = dma.done.wait (!%p779_p2), %s484_s22, 128  }
 0x19f   : > { %1005 = vsyncadd (!%p779_p2), %s484_s22, 4294967168  ;;  %s22_s17 = sadd.s32 1, %s1028_s17   ;;  %s1368_s23 = sld [smem:[#allocation13_spill]] }
 0x1a0   : > { %p19_p10 = scmp.ge.s32.totalorder %s22_s17, 6   ;;  %s1369_s12 = smov %s1012_s13 }
 0x1a1   : > { %s1370_s13 = smov %s1016_s14  ;;  %s1371_s14 = smov %s1193_s21 }
 0x1a2   : > { %s1372_s15 = smov %s1024_s16  ;;  %21 = sbr.rel (!%p19_p10) target bundleno = 11 (0xb), region = 96 }
 0x1a5   : > { %s1373_s16 = smov %s1368_s23 }
 0x1a9   :  { %489 = vsyncpa [#allocation3], 1 }
 0x1aa   :  { %491 = vsyncpa [#allocation3 + $0x1], 1 }
 0x1ab   :  { %492 = vsyncpa [#allocation6], 1 }
 0x1ac   :  { %494 = vsyncpa [#allocation6 + $0x1], 1 }
 0x1ad   :  { %495 = vsyncpa [#allocation4], 1 }
 0x1ae   :  { %497 = vsyncpa [#allocation4 + $0x1], 1 }

</bundles_post_ra>
